<compile_context>
chip_gen: v6e
topology: v6e:2x2x1
jax: 0.10.0
libtpu: 0.0.40
codegen_flags: <defaults>
</compile_context>

<pallas_src>
import functools

import jax
import jax.numpy as jnp
from jax import lax
from jax.experimental import pallas as pl
from jax.experimental.pallas import tpu as pltpu


def _round_up(x, m):
    return ((x + m - 1) // m) * m


def _tpu_vmem_capacity_bytes():
    try:
        info = pltpu.get_tpu_info()
        cap = int(getattr(info, "vmem_capacity_bytes", 0))
        if cap > 0:
            return cap
    except Exception:
        pass
    return 64 << 20  # conservative fallback (v7x per-TensorCore capacity)


def _label_smoothing_kernel(pred_ref, tgt_ref, out_ref, m_sc, l_sc, ws_sc, *,
                            base, confidence, tiles_per_core, tile_n, tile_c,
                            total_n, num_classes, mask_lanes):
    core = pl.program_id(0)
    i = pl.program_id(1)          # row-tile index within this core
    j = pl.program_id(2)          # class-tile index (online-logsumexp axis)

    @pl.when((i == 0) & (j == 0))
    def _():
        out_ref[...] = jnp.zeros(out_ref.shape, out_ref.dtype)

    @pl.when(j == 0)
    def _():
        m_sc[...] = jnp.full(m_sc.shape, -jnp.inf, m_sc.dtype)
        l_sc[...] = jnp.zeros(l_sc.shape, l_sc.dtype)
        ws_sc[...] = jnp.zeros(ws_sc.shape, ws_sc.dtype)

    x = pred_ref[...].astype(jnp.float32)                        # (tile_n, tile_c)
    tgt = tgt_ref[...]                                           # (tile_n, 1) int32
    col = j * tile_c + lax.broadcasted_iota(jnp.int32, x.shape, 1)

    # Folded smoothed cross-entropy: sum_c(true_dist) == 1, so
    #   row_loss = lse - sum_c( (base + (conf-base)*onehot_c) * x_c )
    wx = jnp.where(col == tgt, confidence, base) * x             # weighted logits
    if mask_lanes:
        # Last class tile is padded past C: mask with selects so stale
        # NaN/Inf in padded lanes can never leak into the reductions.
        valid = col < num_classes
        wx = jnp.where(valid, wx, 0.0)
        x = jnp.where(valid, x, -jnp.inf)

    # Online logsumexp update: 3 lane reductions (max, sum-exp, weighted-sum).
    m_prev = m_sc[...]
    m_new = jnp.maximum(m_prev, jnp.max(x, axis=-1, keepdims=True))
    l_sc[...] = l_sc[...] * jnp.exp(m_prev - m_new) + jnp.sum(
        jnp.exp(x - m_new), axis=-1, keepdims=True)
    ws_sc[...] = ws_sc[...] + jnp.sum(wx, axis=-1, keepdims=True)
    m_sc[...] = m_new

    @pl.when(j == pl.num_programs(2) - 1)
    def _():
        lse = jnp.log(l_sc[...]) + m_sc[...]
        row_loss = lse - ws_sc[...]                              # (tile_n, 1)
        # Mask rows past the real batch (remainder tile / clamped redundant
        # tile) with a select; stale rows may be NaN.
        row_start = (core * tiles_per_core + i) * tile_n
        rows = row_start + lax.broadcasted_iota(jnp.int32, (tile_n, 1), 0)
        row_loss = jnp.where(rows < total_n, row_loss, 0.0)
        # Fold vreg-wise to (8,1) (pure elementwise adds, no cross-lane moves)
        # and accumulate into lane 0 of this core's (8,128) output tile.
        folded = jnp.sum(row_loss.reshape(tile_n // 8, 8, 1), axis=0)
        out_ref[:, 0:1] += folded


def label_smoothing_loss(pred, target, *, classes, smoothing=0.0,
                         max_tile_n=None, max_tile_c=2048, num_cores=None):
    """Pallas implementation of LabelSmoothingLoss.forward (dim=-1)."""
    assert pred.ndim == 2 and pred.shape[-1] == classes
    n, c = pred.shape
    confidence = 1.0 - smoothing
    base = smoothing / (classes - 1) if classes > 1 else 0.0

    # --- generation-aware VMEM budget & core split --------------------------
    vmem_cap = _tpu_vmem_capacity_bytes()
    # Leave headroom below physical capacity for tgt/out double-buffers and
    # Mosaic internal scratch: ~54 MiB on v7x, ~109 MiB on v5e/v6e.
    vmem_limit = max(32 << 20, min(int(vmem_cap * 0.85), vmem_cap - (8 << 20)))
    tile_budget = vmem_limit // 2        # per-step working-set budget

    if num_cores is None:
        # 64-MiB-VMEM parts (v7x-like) have 2 TensorCores per chip; v5e/v6e
        # have one, where a core split is pure serial-loop overhead.
        num_cores = 2 if vmem_cap <= (64 << 20) else 1

    # --- tile sizes ----------------------------------------------------------
    sublane = 16 if pred.dtype == jnp.bfloat16 else 8
    max_tile_c = max(128, (max_tile_c // 128) * 128)
    tile_c = c if c <= max_tile_c else max_tile_c
    num_class_tiles = pl.cdiv(c, tile_c)
    mask_lanes = (c % tile_c) != 0

    # Working set per step: double-buffered pred tile (input dtype) plus ~3 f32
    # intermediates (x upcast, exp(x-m), weighted logits) of the same shape.
    per_row_bytes = tile_c * (2 * pred.dtype.itemsize + 3 * 4) + 64
    tile_n = tile_budget // per_row_bytes
    tile_n = min(tile_n, 4096, _round_up(n, sublane))
    if max_tile_n is not None:
        tile_n = min(tile_n, max_tile_n)
    tile_n = max((tile_n // sublane) * sublane, sublane)

    num_row_blocks = pl.cdiv(n, tile_n)
    num_cores = max(1, min(num_cores, num_row_blocks))
    tiles_per_core = pl.cdiv(num_row_blocks, num_cores)
    max_block = num_row_blocks - 1

    # Clamp the block index so padded (core, i) steps re-read a valid block;
    # their rows are masked in the kernel via the *unclamped* row index.
    def pred_map(core, i, j):
        return (jnp.minimum(core * tiles_per_core + i, max_block), j)

    def tgt_map(core, i, j):
        return (jnp.minimum(core * tiles_per_core + i, max_block), 0)

    def out_map(core, i, j):
        return (core, 0)

    tgt2d = target.astype(jnp.int32).reshape(n, 1)

    kernel = functools.partial(
        _label_smoothing_kernel,
        base=float(base), confidence=float(confidence),
        tiles_per_core=tiles_per_core, tile_n=tile_n, tile_c=tile_c,
        total_n=n, num_classes=c, mask_lanes=mask_lanes)

    partials = pl.pallas_call(
        kernel,
        out_shape=jax.ShapeDtypeStruct((num_cores * 8, 128), jnp.float32),
        grid_spec=pltpu.PrefetchScalarGridSpec(
            num_scalar_prefetch=0,
            grid=(num_cores, tiles_per_core, num_class_tiles),
            in_specs=[
                pl.BlockSpec((tile_n, tile_c), pred_map),
                pl.BlockSpec((tile_n, 1), tgt_map),
            ],
            out_specs=pl.BlockSpec((8, 128), out_map),
            scratch_shapes=[pltpu.VMEM((tile_n, 1), jnp.float32)] * 3,
        ),
        compiler_params=pltpu.CompilerParams(
            dimension_semantics=("parallel", "arbitrary", "arbitrary"),
            vmem_limit_bytes=int(vmem_limit)),
    )(pred, tgt2d)

    # Raw partial sums live in lane 0 of each core's (8,128) tile; the single
    # 1/N scale happens once here.
    return jnp.sum(partials) / n


def _reference_loss(pred, target, classes, smoothing):
    confidence = 1.0 - smoothing
    logp = jax.nn.log_softmax(pred.astype(jnp.float32), axis=-1)
    true_dist = jnp.full_like(logp, smoothing / (classes - 1))
    true_dist = true_dist.at[jnp.arange(pred.shape[0]), target].set(confidence)
    return jnp.mean(jnp.sum(-true_dist * logp, axis=-1))


if __name__ == "__main__":
    smoothing = 0.1
    key = jax.random.PRNGKey(0)
    k1, k2, k3, k4 = jax.random.split(key, 4)

    # Case 1: small/medium C, default budget-driven config (single class tile).
    N1, C1 = 40, 128
    pred1 = jax.random.normal(k1, (N1, C1), dtype=jnp.float32)
    tgt1 = jax.random.randint(k2, (N1,), 0, C1, dtype=jnp.int32)
    ref1 = _reference_loss(pred1, tgt1, C1, smoothing)
    out1 = jax.block_until_ready(
        label_smoothing_loss(pred1, tgt1, classes=C1, smoothing=smoothing))
    assert jnp.allclose(out1, ref1, rtol=1e-5, atol=1e-5), (out1, ref1)

    # Case 2: tiny row tiles + forced 2-way core split -> multi-tile
    # accumulation, odd block count (clamped redundant tile) and
    # remainder-row masking.
    out2 = jax.block_until_ready(
        label_smoothing_loss(pred1, tgt1, classes=C1, smoothing=smoothing,
                             max_tile_n=16, num_cores=2))
    assert jnp.allclose(out2, ref1, rtol=1e-5, atol=1e-5), (out2, ref1)

    # Case 3: bf16 logits + forced class tiling with a padded last class tile
    # (C=320, tile_c=128) -> exercises the online-logsumexp path + lane masking.
    N3, C3 = 24, 320
    pred3 = jax.random.normal(k3, (N3, C3), dtype=jnp.float32).astype(jnp.bfloat16)
    tgt3 = jax.random.randint(k4, (N3,), 0, C3, dtype=jnp.int32)
    ref3 = _reference_loss(pred3, tgt3, C3, smoothing)
    out3 = jax.block_until_ready(
        label_smoothing_loss(pred3, tgt3, classes=C3, smoothing=smoothing,
                             max_tile_c=128))
    assert jnp.allclose(out3, ref3, rtol=1e-4, atol=1e-4), (out3, ref3)

    print("KERNEL_OK")
</pallas_src>

<mosaic_0001>
module attributes {stable_mosaic.version = 11 : i64} {
  func.func @_label_smoothing_kernel(%arg0: i32, %arg1: i32, %arg2: i32, %arg3: memref<40x128xf32, #tpu.memory_space<vmem>>, %arg4: memref<40x1xi32, #tpu.memory_space<vmem>>, %arg5: memref<8x128xf32, #tpu.memory_space<vmem>>, %arg6: memref<40x1xf32, #tpu.memory_space<vmem>>, %arg7: memref<40x1xf32, #tpu.memory_space<vmem>>, %arg8: memref<40x1xf32, #tpu.memory_space<vmem>>) attributes {dimension_semantics = [#tpu.dimension_semantics<parallel>, #tpu.dimension_semantics<arbitrary>, #tpu.dimension_semantics<arbitrary>], iteration_bounds = array<i64: 1, 1, 1>, scalar_prefetch = 0 : i64, scratch_operands = 3 : i64, tpu.core_type = #tpu.core_type<tc>, window_params = [{transform_indices = @transform_0, window_bounds = array<i64: 40, 128>}, {transform_indices = @transform_1, window_bounds = array<i64: 40, 1>}, {transform_indices = @transform_2, window_bounds = array<i64: 8, 128>}]} {
    %c0_i32 = arith.constant 0 : i32
    %0 = arith.cmpi eq, %arg1, %c0_i32 : i32
    %c0_i32_0 = arith.constant 0 : i32
    %1 = arith.cmpi eq, %arg2, %c0_i32_0 : i32
    %2 = arith.andi %0, %1 : i1
    %3 = arith.extui %2 : i1 to i32
    %c0_i32_1 = arith.constant 0 : i32
    %4 = arith.cmpi ne, %3, %c0_i32_1 : i32
    scf.if %4 {
      %cst_25 = arith.constant 0.000000e+00 : f32
      %44 = vector.broadcast %cst_25 : f32 to vector<8x128xf32>
      %c0_26 = arith.constant 0 : index
      %c0_27 = arith.constant 0 : index
      %45 = vector.load %arg5[%c0_26, %c0_27] : memref<8x128xf32, #tpu.memory_space<vmem>>, vector<8x128xf32>
      tpu.vector_store %arg5[%c0_26, %c0_27], %44 {strides = array<i32>} : memref<8x128xf32, #tpu.memory_space<vmem>>, vector<8x128xf32>,
    } else {
    }
    %c0_i32_2 = arith.constant 0 : i32
    %5 = arith.cmpi eq, %arg2, %c0_i32_2 : i32
    %6 = arith.extui %5 : i1 to i32
    %c0_i32_3 = arith.constant 0 : i32
    %7 = arith.cmpi ne, %6, %c0_i32_3 : i32
    scf.if %7 {
      %cst_25 = arith.constant 0xFF800000 : f32
      %44 = vector.broadcast %cst_25 : f32 to vector<40x1xf32>
      %c0_26 = arith.constant 0 : index
      %c0_27 = arith.constant 0 : index
      %45 = vector.load %arg6[%c0_26, %c0_27] : memref<40x1xf32, #tpu.memory_space<vmem>>, vector<40x1xf32>
      tpu.vector_store %arg6[%c0_26, %c0_27], %44 {strides = array<i32>} : memref<40x1xf32, #tpu.memory_space<vmem>>, vector<40x1xf32>,
      %cst_28 = arith.constant 0.000000e+00 : f32
      %46 = vector.broadcast %cst_28 : f32 to vector<40x1xf32>
      %c0_29 = arith.constant 0 : index
      %c0_30 = arith.constant 0 : index
      %47 = vector.load %arg7[%c0_29, %c0_30] : memref<40x1xf32, #tpu.memory_space<vmem>>, vector<40x1xf32>
      tpu.vector_store %arg7[%c0_29, %c0_30], %46 {strides = array<i32>} : memref<40x1xf32, #tpu.memory_space<vmem>>, vector<40x1xf32>,
      %cst_31 = arith.constant 0.000000e+00 : f32
      %48 = vector.broadcast %cst_31 : f32 to vector<40x1xf32>
      %c0_32 = arith.constant 0 : index
      %c0_33 = arith.constant 0 : index
      %49 = vector.load %arg8[%c0_32, %c0_33] : memref<40x1xf32, #tpu.memory_space<vmem>>, vector<40x1xf32>
      tpu.vector_store %arg8[%c0_32, %c0_33], %48 {strides = array<i32>} : memref<40x1xf32, #tpu.memory_space<vmem>>, vector<40x1xf32>,
    } else {
    }
    %c0 = arith.constant 0 : index
    %c0_4 = arith.constant 0 : index
    %8 = vector.load %arg3[%c0, %c0_4] : memref<40x128xf32, #tpu.memory_space<vmem>>, vector<40x128xf32>
    %c0_5 = arith.constant 0 : index
    %c0_6 = arith.constant 0 : index
    %9 = vector.load %arg4[%c0_5, %c0_6] : memref<40x1xi32, #tpu.memory_space<vmem>>, vector<40x1xi32>
    %c128_i32 = arith.constant 128 : i32
    %10 = arith.muli %arg2, %c128_i32 : i32
    %11 = tpu.iota {dimensions = array<i32: 1>} : vector<40x128xi32>
    %12 = vector.broadcast %10 : i32 to vector<40x128xi32>
    %13 = arith.addi %12, %11 : vector<40x128xi32>
    %14 = vector.broadcast %9 : vector<40x1xi32> to vector<40x128xi32>
    %15 = arith.cmpi eq, %13, %14 : vector<40x128xi32>
    %cst = arith.constant 0.899999976 : f32
    %cst_7 = arith.constant 7.87401571E-4 : f32
    %16 = vector.broadcast %cst : f32 to vector<40x128xf32>
    %17 = vector.broadcast %cst_7 : f32 to vector<40x128xf32>
    %18 = arith.select %15, %16, %17 : vector<40x128xi1>, vector<40x128xf32>
    %19 = arith.mulf %18, %8 : vector<40x128xf32>
    %c0_8 = arith.constant 0 : index
    %c0_9 = arith.constant 0 : index
    %20 = vector.load %arg6[%c0_8, %c0_9] : memref<40x1xf32, #tpu.memory_space<vmem>>, vector<40x1xf32>
    %cst_10 = arith.constant dense<0xFF800000> : vector<40xf32>
    %21 = vector.multi_reduction <maximumf>, %8, %cst_10 [1] : vector<40x128xf32> to vector<40xf32>
    %22 = vector.shape_cast %21 : vector<40xf32> to vector<40x1xf32>
    %23 = arith.maximumf %20, %22 : vector<40x1xf32>
    %c0_11 = arith.constant 0 : index
    %c0_12 = arith.constant 0 : index
    %24 = vector.load %arg7[%c0_11, %c0_12] : memref<40x1xf32, #tpu.memory_space<vmem>>, vector<40x1xf32>
    %25 = arith.subf %20, %23 : vector<40x1xf32>
    %26 = math.exp %25 : vector<40x1xf32>
    %27 = arith.mulf %24, %26 : vector<40x1xf32>
    %28 = vector.broadcast %23 : vector<40x1xf32> to vector<40x128xf32>
    %29 = arith.subf %8, %28 : vector<40x128xf32>
    %30 = math.exp %29 : vector<40x128xf32>
    %cst_13 = arith.constant dense<0.000000e+00> : vector<40xf32>
    %31 = vector.multi_reduction <add>, %30, %cst_13 [1] : vector<40x128xf32> to vector<40xf32>
    %32 = vector.shape_cast %31 : vector<40xf32> to vector<40x1xf32>
    %33 = arith.addf %27, %32 : vector<40x1xf32>
    %c0_14 = arith.constant 0 : index
    %c0_15 = arith.constant 0 : index
    %34 = vector.load %arg7[%c0_14, %c0_15] : memref<40x1xf32, #tpu.memory_space<vmem>>, vector<40x1xf32>
    tpu.vector_store %arg7[%c0_14, %c0_15], %33 {strides = array<i32>} : memref<40x1xf32, #tpu.memory_space<vmem>>, vector<40x1xf32>,
    %c0_16 = arith.constant 0 : index
    %c0_17 = arith.constant 0 : index
    %35 = vector.load %arg8[%c0_16, %c0_17] : memref<40x1xf32, #tpu.memory_space<vmem>>, vector<40x1xf32>
    %cst_18 = arith.constant dense<0.000000e+00> : vector<40xf32>
    %36 = vector.multi_reduction <add>, %19, %cst_18 [1] : vector<40x128xf32> to vector<40xf32>
    %37 = vector.shape_cast %36 : vector<40xf32> to vector<40x1xf32>
    %38 = arith.addf %35, %37 : vector<40x1xf32>
    %c0_19 = arith.constant 0 : index
    %c0_20 = arith.constant 0 : index
    %39 = vector.load %arg8[%c0_19, %c0_20] : memref<40x1xf32, #tpu.memory_space<vmem>>, vector<40x1xf32>
    tpu.vector_store %arg8[%c0_19, %c0_20], %38 {strides = array<i32>} : memref<40x1xf32, #tpu.memory_space<vmem>>, vector<40x1xf32>,
    %c0_21 = arith.constant 0 : index
    %c0_22 = arith.constant 0 : index
    %40 = vector.load %arg6[%c0_21, %c0_22] : memref<40x1xf32, #tpu.memory_space<vmem>>, vector<40x1xf32>
    tpu.vector_store %arg6[%c0_21, %c0_22], %23 {strides = array<i32>} : memref<40x1xf32, #tpu.memory_space<vmem>>, vector<40x1xf32>,
    %c0_i32_23 = arith.constant 0 : i32
    %41 = arith.cmpi eq, %arg2, %c0_i32_23 : i32
    %42 = arith.extui %41 : i1 to i32
    %c0_i32_24 = arith.constant 0 : i32
    %43 = arith.cmpi ne, %42, %c0_i32_24 : i32
    scf.if %43 {
      %c0_25 = arith.constant 0 : index
      %c0_26 = arith.constant 0 : index
      %44 = vector.load %arg7[%c0_25, %c0_26] : memref<40x1xf32, #tpu.memory_space<vmem>>, vector<40x1xf32>
      %45 = math.log %44 : vector<40x1xf32>
      %c0_27 = arith.constant 0 : index
      %c0_28 = arith.constant 0 : index
      %46 = vector.load %arg6[%c0_27, %c0_28] : memref<40x1xf32, #tpu.memory_space<vmem>>, vector<40x1xf32>
      %47 = arith.addf %45, %46 : vector<40x1xf32>
      %c0_29 = arith.constant 0 : index
      %c0_30 = arith.constant 0 : index
      %48 = vector.load %arg8[%c0_29, %c0_30] : memref<40x1xf32, #tpu.memory_space<vmem>>, vector<40x1xf32>
      %49 = arith.subf %47, %48 : vector<40x1xf32>
      %c1_i32 = arith.constant 1 : i32
      %50 = arith.muli %arg0, %c1_i32 : i32
      %51 = arith.addi %50, %arg1 : i32
      %c40_i32 = arith.constant 40 : i32
      %52 = arith.muli %51, %c40_i32 : i32
      %53 = tpu.iota {dimensions = array<i32: 0>} : vector<40x1xi32>
      %54 = vector.broadcast %52 : i32 to vector<40x1xi32>
      %55 = arith.addi %54, %53 : vector<40x1xi32>
      %c40_i32_31 = arith.constant 40 : i32
      %56 = vector.broadcast %c40_i32_31 : i32 to vector<40x1xi32>
      %57 = arith.cmpi slt, %55, %56 : vector<40x1xi32>
      %cst_32 = arith.constant 0.000000e+00 : f32
      %58 = vector.broadcast %cst_32 : f32 to vector<40x1xf32>
      %59 = arith.select %57, %49, %58 : vector<40x1xi1>, vector<40x1xf32>
      %60 = vector.shape_cast %59 : vector<40x1xf32> to vector<5x8x1xf32>
      %cst_33 = arith.constant dense<0.000000e+00> : vector<8x1xf32>
      %61 = vector.multi_reduction <add>, %60, %cst_33 [0] : vector<5x8x1xf32> to vector<8x1xf32>
      %c0_34 = arith.constant 0 : index
      %c0_35 = arith.constant 0 : index
      %62 = vector.load %arg5[%c0_34, %c0_35] : memref<8x128xf32, #tpu.memory_space<vmem>>, vector<8x1xf32>
      %63 = arith.addf %62, %61 : vector<8x1xf32>
      %c0_36 = arith.constant 0 : index
      %c0_37 = arith.constant 0 : index
      %64 = vector.load %arg5[%c0_36, %c0_37] : memref<8x128xf32, #tpu.memory_space<vmem>>, vector<8x1xf32>
      tpu.vector_store %arg5[%c0_36, %c0_37], %63 {strides = array<i32>} : memref<8x128xf32, #tpu.memory_space<vmem>>, vector<8x1xf32>,
    } else {
    }
    return
  }
  func.func @transform_0(%arg0: i32, %arg1: i32, %arg2: i32) -> (i32, i32) {
    %c1_i32 = arith.constant 1 : i32
    %0 = arith.muli %arg0, %c1_i32 : i32
    %1 = arith.addi %0, %arg1 : i32
    %c0_i32 = arith.constant 0 : i32
    %2 = arith.minsi %1, %c0_i32 : i32
    %c0_i32_0 = arith.constant 0 : i32
    return %2, %arg2 : i32, i32
  }
  func.func @transform_1(%arg0: i32, %arg1: i32, %arg2: i32) -> (i32, i32) {
    %c1_i32 = arith.constant 1 : i32
    %0 = arith.muli %arg0, %c1_i32 : i32
    %1 = arith.addi %0, %arg1 : i32
    %c0_i32 = arith.constant 0 : i32
    %2 = arith.minsi %1, %c0_i32 : i32
    %c0_i32_0 = arith.constant 0 : i32
    %c0_i32_1 = arith.constant 0 : i32
    return %2, %c0_i32_0 : i32, i32
  }
  func.func @transform_2(%arg0: i32, %arg1: i32, %arg2: i32) -> (i32, i32) {
    %c0_i32 = arith.constant 0 : i32
    %c0_i32_0 = arith.constant 0 : i32
    return %arg0, %c0_i32 : i32, i32
  }
}

</mosaic_0001>

<bundles_post_ra>
// kernel: tpu_custom_call.1
= control target key start
LH: loop header
LB: loop body
LE: loop exit
PB: predicated region body
PF: predicated region fallthrough
CT: control target
= control target key end

     0   :  { %s616_s0 = inlined_call_operand.vmem [shape: f32[40,128], index: 0, kind: input, shape index: {}]   ;;  %s617_s1 = inlined_call_operand.vmem [shape: s32[40,1], index: 1, kind: input, shape index: {}]   ;;  %s618_s2 = inlined_call_operand.hbm [shape: f32[8,128], index: 2, kind: output, shape index: {}]  }
   0x1   :  { %v465_v0 = vld [vmem:[%s616_s0] sm:$0xff]  ;;  %v470_v1 = vld [vmem:[%s616_s0 + $0x10] sm:$0xff] }
   0x2   :  { %152 = vmax.xlane.f32.xlu0 %v465_v0  ;;  %156 = vmax.xlane.f32.xlu1 %v470_v1 }
   0x3   :  { %7 = vsyncpa [#allocation6], 0  ;;  %v477_v2 = vld [vmem:[%s616_s0 + $0x8] sm:$0xff]  ;;  %v482_v3 = vld [vmem:[%s616_s0 + $0x18] sm:$0xff]  ;;  %vm86_vm0 = vcmask 7168   ;;  %v442_v4 = vmov -inf   ;;  %v113_v48 = vlaneseq }
   0x4   :  { %87 = vst.msk [vmem:[#allocation2] sm:$0xff] %vm86_vm0, %v442_v4  ;;  %88 = vst.msk [vmem:[#allocation2 + $0x8] sm:$0xff] %vm86_vm0, %v442_v4  ;;  %v494_v5 = vld [vmem:[%s616_s0 + $0x20] sm:$0xff]  ;;  %v443_v6 = vmov 0   ;;  %v444_v7 = vmov 0.0   ;;  %v108_v29 = vld [vmem:[%s617_s1 + $0x8] sm:$0xff] }
   0x5   :  { %89 = vst.msk [vmem:[#allocation2 + $0x10] sm:$0xff] %vm86_vm0, %v442_v4  ;;  %90 = vst.msk [vmem:[#allocation2 + $0x18] sm:$0xff] %vm86_vm0, %v442_v4  ;;  %388 = vset.pattern.permute.xlu1 %v443_v6  ;;  %389 = vset.pattern.permute.xlu0 %v443_v6  ;;  %v107_v28 = vld [vmem:[%s617_s1] sm:$0xff]  ;;  %v109_v30 = vld [vmem:[%s617_s1 + $0x10] sm:$0xff]  ;;  %v114_v51 = vand.u32 127, %v113_v48 }
   0x6   :  { %91 = vst.msk [vmem:[#allocation2 + $0x20] sm:$0xff] %vm86_vm0, %v442_v4  ;;  %154 = vmax.xlane.f32.xlu0 %v477_v2  ;;  %158 = vmax.xlane.f32.xlu1 %v482_v3  ;;  %92 = vst.msk [vmem:[#allocation3] sm:$0xff] %vm86_vm0, %v444_v7  ;;  %v110_v31 = vld [vmem:[%s617_s1 + $0x18] sm:$0xff]  ;;  %v111_v32 = vld [vmem:[%s617_s1 + $0x20] sm:$0xff]  ;;  %v445_v57 = vmov 0.0007874016  }
   0x7   :  { %82 = vst [vmem:[#allocation5] sm:$0xff] %v444_v7  ;;  %93 = vst.msk [vmem:[#allocation3 + $0x8] sm:$0xff] %vm86_vm0, %v444_v7  ;;  %s446_s1 = smov [#allocation5]  }
   0x8   :  { %94 = vst.msk [vmem:[#allocation3 + $0x10] sm:$0xff] %vm86_vm0, %v444_v7  ;;  %95 = vst.msk [vmem:[#allocation3 + $0x18] sm:$0xff] %vm86_vm0, %v444_v7  ;;  %s363_s28 = sshll.u32 %s446_s1, 4  ;;  %s364_s28 = int_to_ptr.vmem [resolvable:$true] %s363_s28 }
   0x9   :  { %96 = vst.msk [vmem:[#allocation3 + $0x20] sm:$0xff] %vm86_vm0, %v444_v7  ;;  %97 = vst.msk [vmem:[#allocation4] sm:$0xff] %vm86_vm0, %v444_v7  ;;  %s420_s29 = scalar_lea.vmem %s364_s28, 128  ;;  %p425_p1 = scmp.lt.s32.totalorder %s364_s28, %s364_s28 }
   0xa   :  { %160 = vmax.xlane.f32.xlu0 %v494_v5  ;;  %98 = vst.msk [vmem:[#allocation4 + $0x8] sm:$0xff] %vm86_vm0, %v444_v7  ;;  %99 = vst.msk [vmem:[#allocation4 + $0x10] sm:$0xff] %vm86_vm0, %v444_v7  ;;  %p421_p0 = scmp.ne.s32.totalorder %s364_s28, %s420_s29  ;;  %p426_p2 = scmp.lt.s32.totalorder %s420_s29, %s420_s29 }
   0xb   :  { %100 = vst.msk [vmem:[#allocation4 + $0x18] sm:$0xff] %vm86_vm0, %v444_v7  ;;  %101 = vst.msk [vmem:[#allocation4 + $0x20] sm:$0xff] %vm86_vm0, %v444_v7  ;;  %v507_v8 = vld [vmem:[#allocation2] sm:$0xff]  ;;  %v517_v14 = vld [vmem:[#allocation2 + $0x8] sm:$0xff] }
   0xc   :  { %v509_v9 = vld [vmem:[#allocation2 + $0x10] sm:$0xff]  ;;  %v519_v15 = vld [vmem:[#allocation2 + $0x18] sm:$0xff]  ;;  %p427_p3 = por %p426_p2, %p425_p1 }
   0xd   :  { %v536_v22 = vld [vmem:[#allocation2 + $0x20] sm:$0xff] }
   0xe   :  { %p428_p4 = pnand %p427_p3, %p421_p0 }
  0x8b   :  { %v153_v10 = vpop.xlane.xlu0 %152  ;;  %v157_v11 = vpop.xlane.xlu1 %156 }
  0x8c   :  { %v512_v12 = vmax.f32 %v507_v8, %v153_v10  ;;  %v515_v13 = vmax.f32 %v509_v9, %v157_v11 }
  0x8e   :  { %v172_v16 = vsub.f32 %v507_v8, %v512_v12  ;;  %278 = vst.msk [vmem:[#allocation2] sm:$0xff] %vm86_vm0, %v512_v12  ;;  %194 = vperm.xlu1 %388, %v512_v12   ;;  %v174_v17 = vsub.f32 %v509_v9, %v515_v13  ;;  %280 = vst.msk [vmem:[#allocation2 + $0x10] sm:$0xff] %vm86_vm0, %v515_v13  ;;  %v167_v12 = vld [vmem:[#allocation3] sm:$0xff] }
  0x8f   :  { %v155_v18 = vpop.xlane.xlu0 %154  ;;  %v159_v19 = vpop.xlane.xlu1 %158 }
  0x90   :  { %v531_v20 = vmax.f32 %v517_v14, %v155_v18  ;;  %v534_v21 = vmax.f32 %v519_v15, %v159_v19 }
  0x92   :  { %v173_v23 = vsub.f32 %v517_v14, %v531_v20  ;;  %279 = vst.msk [vmem:[#allocation2 + $0x8] sm:$0xff] %vm86_vm0, %v531_v20  ;;  %199 = vperm.xlu0 %389, %v531_v20   ;;  %204 = vperm.xlu1 %388, %v515_v13   ;;  %v175_v24 = vsub.f32 %v519_v15, %v534_v21  ;;  %281 = vst.msk [vmem:[#allocation2 + $0x18] sm:$0xff] %vm86_vm0, %v534_v21 }
  0x93   :  { %v161_v25 = vpop.xlane.xlu0 %160 }
  0x94   :  { %v549_v26 = vmax.f32 %v536_v22, %v161_v25 }
  0x96   :  { %209 = vperm.xlu1 %388, %v534_v21   ;;  %v176_v27 = vsub.f32 %v536_v22, %v549_v26  ;;  %282 = vst.msk [vmem:[#allocation2 + $0x20] sm:$0xff] %vm86_vm0, %v549_v26 }
  0x9a   :  { %214 = vperm.xlu1 %388, %v549_v26   ;;  %v170_v26 = vld [vmem:[#allocation3 + $0x18] sm:$0xff] }
  0x9e   :  { %118 = vperm.xlu1 %388, %v107_v28  }
  0xa2   :  { %121 = vperm.xlu1 %388, %v108_v29  }
  0xa6   :  { %124 = vperm.xlu1 %388, %v109_v30  }
  0xaa   :  { %127 = vperm.xlu1 %388, %v110_v31   ;;  %v171_v31 = vld [vmem:[#allocation3 + $0x20] sm:$0xff] }
  0xae   :  { %130 = vperm.xlu1 %388, %v111_v32  }
 0x109   :  { %v195_v33 = vpop.permute.xlu1 %194 }
 0x10a   :  { %v217_v34 = vsub.f32 %v465_v0, %v195_v33 }
 0x10c   :  { %v222_v35 = vmul.f32 1.442695, %v217_v34 }
 0x10d   :  { %v200_v36 = vpop.permute.xlu0 %199  ;;  %v205_v37 = vpop.permute.xlu1 %204 }
 0x10e   :  { %390 = vpow2.f32 %v222_v35  ;;  %v218_v38 = vsub.f32 %v477_v2, %v200_v36  ;;  %v219_v39 = vsub.f32 %v470_v1, %v205_v37  ;;  %v253_v35 = vld [vmem:[#allocation4] sm:$0xff] }
 0x110   :  { %v224_v40 = vmul.f32 1.442695, %v218_v38  ;;  %v226_v41 = vmul.f32 1.442695, %v219_v39 }
 0x111   :  { %v210_v42 = vpop.permute.xlu1 %209 }
 0x112   :  { %392 = vpow2.f32 %v224_v40  ;;  %v220_v43 = vsub.f32 %v482_v3, %v210_v42 }
 0x113   :  { %394 = vpow2.f32 %v226_v41  ;;  %v254_v41 = vld [vmem:[#allocation4 + $0x8] sm:$0xff] }
 0x114   :  { %v228_v44 = vmul.f32 1.442695, %v220_v43  ;;  %v255_v43 = vld [vmem:[#allocation4 + $0x10] sm:$0xff] }
 0x115   :  { %v215_v45 = vpop.permute.xlu1 %214 }
 0x116   :  { %396 = vpow2.f32 %v228_v44  ;;  %v221_v46 = vsub.f32 %v494_v5, %v215_v45 }
 0x118   :  { %v230_v47 = vmul.f32 1.442695, %v221_v46 }
 0x119   :  { %v119_v49 = vpop.permute.xlu1 %118 }
 0x11a   :  { %398 = vpow2.f32 %v230_v47  ;;  %vm132_vm1 = vcmp.eq.s32.totalorder %v114_v51, %v119_v49  ;;  %v256_v49 = vld [vmem:[#allocation4 + $0x18] sm:$0xff] }
 0x11b   :  { %v391_v50 = vpop.eup %390  ;;  %v137_v58 = vsel %vm132_vm1, 0.9, %v445_v57 }
 0x11c   :  { %232 = vadd.xlane.f32.xlu0 %v391_v50  ;;  %v142_v62 = vmul.f32 %v137_v58, %v465_v0  ;;  %v177_v0 = vmul.f32 1.442695, %v172_v16  ;;  %v257_v50 = vld [vmem:[#allocation4 + $0x20] sm:$0xff] }
 0x11d   :  { %v122_v52 = vpop.permute.xlu1 %121 }
 0x11e   :  { %vm133_vm2 = vcmp.eq.s32.totalorder %v114_v51, %v122_v52  ;;  %400 = vpow2.f32 %v177_v0 }
 0x11f   :  { %v393_v53 = vpop.eup %392  ;;  %v138_v61 = vsel %vm133_vm2, 0.9, %v445_v57 }
 0x120   :  { %v395_v54 = vpop.eup %394  ;;  %234 = vadd.xlane.f32.xlu1 %v393_v53  ;;  %v143_v6 = vmul.f32 %v138_v61, %v477_v2  ;;  %v179_v2 = vmul.f32 1.442695, %v173_v23  ;;  %v168_v23 = vld [vmem:[#allocation3 + $0x8] sm:$0xff] }
 0x121   :  { %236 = vadd.xlane.f32.xlu0 %v395_v54  ;;  %v125_v55 = vpop.permute.xlu1 %124 }
 0x122   :  { %vm134_vm3 = vcmp.eq.s32.totalorder %v114_v51, %v125_v55  ;;  %402 = vpow2.f32 %v179_v2 }
 0x123   :  { %v397_v56 = vpop.eup %396  ;;  %v139_v63 = vsel %vm134_vm3, 0.9, %v445_v57 }
 0x124   :  { %v144_v10 = vmul.f32 %v139_v63, %v470_v1  ;;  %v181_v1 = vmul.f32 1.442695, %v174_v17  ;;  %v169_v17 = vld [vmem:[#allocation3 + $0x10] sm:$0xff] }
 0x125   :  { %238 = vadd.xlane.f32.xlu0 %v397_v56  ;;  %v128_v59 = vpop.permute.xlu1 %127 }
 0x126   :  { %vm135_vm4 = vcmp.eq.s32.totalorder %v114_v51, %v128_v59  ;;  %404 = vpow2.f32 %v181_v1  ;;  %v301_v59 = vld [vmem:[#allocation2] sm:$0xff] }
 0x127   :  { %v399_v60 = vpop.eup %398  ;;  %v140_v7 = vsel %vm135_vm4, 0.9, %v445_v57 }
 0x128   :  { %240 = vadd.xlane.f32.xlu1 %v399_v60  ;;  %v145_v18 = vmul.f32 %v140_v7, %v482_v3  ;;  %v183_v3 = vmul.f32 1.442695, %v175_v24 }
 0x129   :  { %258 = vadd.xlane.f32.xlu0 %v142_v62  ;;  %v131_v4 = vpop.permute.xlu1 %130 }
 0x12a   :  { %vm136_vm5 = vcmp.eq.s32.totalorder %v114_v51, %v131_v4  ;;  %406 = vpow2.f32 %v183_v3 }
 0x12b   :  { %v141_v11 = vsel %vm136_vm5, 0.9, %v445_v57  ;;  %v401_v8 = vpop.eup %400 }
 0x12c   :  { %260 = vadd.xlane.f32.xlu1 %v143_v6  ;;  %v146_v19 = vmul.f32 %v141_v11, %v494_v5  ;;  %v185_v5 = vmul.f32 1.442695, %v176_v27  ;;  %v187_v14 = vmul.f32 %v401_v8, %v167_v12  ;;  %v302_v6 = vld [vmem:[#allocation2 + $0x8] sm:$0xff]  ;;  %v304_v12 = vld [vmem:[#allocation2 + $0x18] sm:$0xff] }
 0x12d   :  { %262 = vadd.xlane.f32.xlu0 %v144_v10  ;;  %v303_v10 = vld [vmem:[#allocation2 + $0x10] sm:$0xff] }
 0x12e   :  { %408 = vpow2.f32 %v185_v5 }
 0x12f   :  { %v403_v16 = vpop.eup %402 }
 0x130   :  { %264 = vadd.xlane.f32.xlu1 %v145_v18  ;;  %v188_v25 = vmul.f32 %v403_v16, %v168_v23 }
 0x131   :  { %266 = vadd.xlane.f32.xlu0 %v146_v19 }
 0x133   :  { %v405_v9 = vpop.eup %404 }
 0x134   :  { %v189_v15 = vmul.f32 %v405_v9, %v169_v17 }
 0x137   :  { %v407_v24 = vpop.eup %406 }
 0x138   :  { %v190_v30 = vmul.f32 %v407_v24, %v170_v26 }
 0x13b   :  { %v409_v29 = vpop.eup %408 }
 0x13c   :  { %v191_v36 = vmul.f32 %v409_v29, %v171_v31 }
 0x1a5   :  { %v233_v20 = vpop.xlane.xlu0 %232 }
 0x1a6   :  { %v242_v13 = vadd.f32 %v233_v20, %v187_v14 }
 0x1a8   :  { %248 = vst.msk [vmem:[#allocation3] sm:$0xff] %vm86_vm0, %v242_v13 }
 0x1a9   :  { %v235_v21 = vpop.xlane.xlu1 %234 }
 0x1aa   :  { %v237_v28 = vpop.xlane.xlu0 %236  ;;  %v243_v22 = vadd.f32 %v235_v21, %v188_v25 }
 0x1ab   :  { %v244_v27 = vadd.f32 %v237_v28, %v189_v15  ;;  %v305_v15 = vld [vmem:[#allocation2 + $0x20] sm:$0xff] }
 0x1ac   :  { %249 = vst.msk [vmem:[#allocation3 + $0x8] sm:$0xff] %vm86_vm0, %v243_v22 }
 0x1ad   :  { %250 = vst.msk [vmem:[#allocation3 + $0x10] sm:$0xff] %vm86_vm0, %v244_v27 }
 0x1ae   :  { %v239_v32 = vpop.xlane.xlu0 %238 }
 0x1af   :  { %v245_v33 = vadd.f32 %v239_v32, %v190_v30  ;;  %v286_v34 = vld [vmem:[#allocation3] sm:$0xff] }
 0x1b0   :  { %410 = vlog2.f32 %v286_v34 }
 0x1b1   :  { %251 = vst.msk [vmem:[#allocation3 + $0x18] sm:$0xff] %vm86_vm0, %v245_v33  ;;  %v241_v37 = vpop.xlane.xlu1 %240 }
 0x1b2   :  { %v259_v38 = vpop.xlane.xlu0 %258  ;;  %v246_v39 = vadd.f32 %v241_v37, %v191_v36 }
 0x1b3   :  { %v268_v40 = vadd.f32 %v259_v38, %v253_v35  ;;  %v287_v42 = vld [vmem:[#allocation3 + $0x8] sm:$0xff] }
 0x1b4   :  { %252 = vst.msk [vmem:[#allocation3 + $0x20] sm:$0xff] %vm86_vm0, %v246_v39  ;;  %v288_v44 = vld [vmem:[#allocation3 + $0x10] sm:$0xff]  ;;  %412 = vlog2.f32 %v287_v42 }
 0x1b5   :  { %273 = vst.msk [vmem:[#allocation4] sm:$0xff] %vm86_vm0, %v268_v40  ;;  %v261_v45 = vpop.xlane.xlu1 %260  ;;  %414 = vlog2.f32 %v288_v44 }
 0x1b6   :  { %v263_v46 = vpop.xlane.xlu0 %262  ;;  %v269_v47 = vadd.f32 %v261_v45, %v254_v41 }
 0x1b7   :  { %v270_v48 = vadd.f32 %v263_v46, %v255_v43 }
 0x1b8   :  { %274 = vst.msk [vmem:[#allocation4 + $0x8] sm:$0xff] %vm86_vm0, %v269_v47  ;;  %v289_v51 = vld [vmem:[#allocation3 + $0x18] sm:$0xff] }
 0x1b9   :  { %275 = vst.msk [vmem:[#allocation4 + $0x10] sm:$0xff] %vm86_vm0, %v270_v48  ;;  %v265_v52 = vpop.xlane.xlu1 %264  ;;  %416 = vlog2.f32 %v289_v51 }
 0x1ba   :  { %v267_v53 = vpop.xlane.xlu0 %266  ;;  %v271_v54 = vadd.f32 %v265_v52, %v256_v49 }
 0x1bb   :  { %v272_v55 = vadd.f32 %v267_v53, %v257_v50  ;;  %v290_v56 = vld [vmem:[#allocation3 + $0x20] sm:$0xff] }
 0x1bc   :  { %276 = vst.msk [vmem:[#allocation4 + $0x18] sm:$0xff] %vm86_vm0, %v271_v54  ;;  %418 = vlog2.f32 %v290_v56  ;;  %v311_v7 = vld [vmem:[#allocation4] sm:$0xff] }
 0x1bd   :  { %v411_v57 = vpop.eup %410  ;;  %277 = vst.msk [vmem:[#allocation4 + $0x20] sm:$0xff] %vm86_vm0, %v272_v55 }
 0x1be   :  { %v292_v58 = vmul.f32 0.6931472, %v411_v57 }
 0x1bf   :  { %v312_v0 = vld [vmem:[#allocation4 + $0x8] sm:$0xff] }
 0x1c0   :  { %v306_v60 = vadd.f32 %v301_v59, %v292_v58  ;;  %v313_v1 = vld [vmem:[#allocation4 + $0x10] sm:$0xff] }
 0x1c1   :  { %v413_v61 = vpop.eup %412 }
 0x1c2   :  { %v415_v62 = vpop.eup %414  ;;  %v294_v63 = vmul.f32 0.6931472, %v413_v61  ;;  %v316_v18 = vsub.f32 %v306_v60, %v311_v7 }
 0x1c3   :  { %v296_v4 = vmul.f32 0.6931472, %v415_v62  ;;  %v314_v17 = vld [vmem:[#allocation4 + $0x18] sm:$0xff] }
 0x1c4   :  { %v307_v11 = vadd.f32 %v302_v6, %v294_v63  ;;  %v345_v14 = vsel %vm86_vm0, %v316_v18, 0.0  ;;  %v315_v22 = vld [vmem:[#allocation4 + $0x20] sm:$0xff] }
 0x1c5   :  { %v308_v19 = vadd.f32 %v303_v10, %v296_v4 }
 0x1c6   :  { %v417_v2 = vpop.eup %416  ;;  %v317_v3 = vsub.f32 %v307_v11, %v312_v0 }
 0x1c7   :  { %v298_v5 = vmul.f32 0.6931472, %v417_v2  ;;  %v318_v8 = vsub.f32 %v308_v19, %v313_v1 }
 0x1c8   :  { %v346_v16 = vsel %vm86_vm0, %v317_v3, 0.0 }
 0x1c9   :  { %v419_v20 = vpop.eup %418  ;;  %v309_v23 = vadd.f32 %v304_v12, %v298_v5  ;;  %v347_v9 = vadd.f32 %v346_v16, %v345_v14  ;;  %v348_v25 = vsel %vm86_vm0, %v318_v8, 0.0 }
 0x1ca   :  { %v300_v13 = vmul.f32 0.6931472, %v419_v20 }
 0x1cb   :  { %v319_v21 = vsub.f32 %v309_v23, %v314_v17  ;;  %v349_v24 = vadd.f32 %v348_v25, %v347_v9 }
 0x1cc   :  { %v310_v28 = vadd.f32 %v305_v15, %v300_v13 }
 0x1cd   :  { %v350_v26 = vsel %vm86_vm0, %v319_v21, 0.0 }
 0x1ce   :  { %v320_v27 = vsub.f32 %v310_v28, %v315_v22  ;;  %v351_v29 = vadd.f32 %v350_v26, %v349_v24 }
 0x1d0   :  { %v352_v30 = vsel %vm86_vm0, %v320_v27, 0.0 }
 0x1d1   :  { %v353_v31 = vadd.f32 %v352_v30, %v351_v29 }
 0x1d3   :  { %356 = vst.msk [vmem:[#allocation5] sm:$0xff] %vm86_vm0, %v353_v31 }
 0x1d4   :  { %431 = shalt.err (!%p428_p4)
}
 0x1d5   :  { %366 = dma.vmem_to_hbm [thread:$0]  %s364_s28, 128, %s618_s2, [#allocation6]  }
 0x1d6   :  { %440 = dma.done.wait [#allocation6], 128  }
 0x1d7   :  { %441 = vsyncadd [#allocation6], 4294967168 }
 0x1d8   :  { %370 = vsyncpa [#allocation6], 1 }

</bundles_post_ra>
